<compile_context>
chip_gen: v6e
topology: v6e:2x2x1
jax: 0.10.0
libtpu: 0.0.40
codegen_flags: <defaults>
</compile_context>

<pallas_src>
import jax
import jax.numpy as jnp
from jax import lax
from jax.experimental import pallas as pl
from jax.experimental.pallas import tpu as pltpu

IN_DIM = 10
HIDDEN_DIM = 32
OUT_DIM = 1

_LANE = 128
_SUBLANE = 8


def _round_up(n, m):
    return ((n + m - 1) // m) * m


def _choose_tile(batch, block_b):
    """Batch tile: multiple of 128 lanes, <= block_b, and ~ceil(B/4) so the
    grid has >=4 steps when the batch allows it (v7x megacore split)."""
    quarter = _round_up(pl.cdiv(max(batch, 1), 4), _LANE)
    return max(_LANE, min(_round_up(block_b, _LANE), quarter))


def _vmem_budget_bytes(tb, hidden, x_itemsize):
    """Actual double-buffered VMEM footprint + headroom (padded tile sizes)."""
    x_buf = tb * _LANE * x_itemsize            # (tb, 10) lane-pads to (tb, 128)
    out_buf = _SUBLANE * tb * 4                # (1, tb) sublane-pads to (8, tb)
    w_bufs = (2 * _round_up(hidden, _SUBLANE) * _LANE + _SUBLANE * _LANE) * 4
    return int(2 * (x_buf + out_buf + w_bufs) + (4 << 20))


def mlp_kernel(x_ref, w1T_ref, b1_ref, w2T_ref, b2_ref, o_ref):
    # x_ref  : (TB, IN_DIM)      native-layout batch tile (f32 or bf16)
    # w1T_ref: (HIDDEN, IN_DIM)  resident across grid steps
    # b1_ref : (HIDDEN, 1)       f32, broadcasts over lanes
    # w2T_ref: (OUT_DIM, HIDDEN) resident
    # b2_ref : (1, 1)            SMEM scalar
    # o_ref  : (OUT_DIM, TB)     lane-dense output tile
    x = x_ref[...]
    # h[hid, b] = sum_k w1T[hid, k] * x[b, k]  -- contract x's minor dim so the
    # batch stays on the 128-lane axis (XLU has full slack for any transpose
    # Mosaic inserts; MXU accumulates in f32).
    h = lax.dot_general(
        w1T_ref[...], x,
        dimension_numbers=(((1,), (1,)), ((), ())),
        preferred_element_type=jnp.float32,
    ) + b1_ref[...]
    h = jnp.maximum(h, 0.0)  # ReLU (always f32)
    # TODO(synk): dropout is identity at inference; training-mode dropout
    # (random mask * 1/(1-p)) intentionally omitted.
    h = h.astype(w2T_ref.dtype)  # no-op in f32 mode; bf16 feed for MXU otherwise
    o_ref[...] = (
        jnp.dot(w2T_ref[...], h, preferred_element_type=jnp.float32) + b2_ref[0, 0]
    )


def simple_model_forward(x, w1, b1, w2, b2, *, block_b=16384, stream_bf16=False):
    """Fused MLP forward pass as a batch-tiled Pallas kernel.

    x  : (B, 10) float32 (consumed in native layout; no pad / transpose copies)
    w1 : (10, hidden) float32, b1 : (1, hidden)
    w2 : (hidden, 1) float32,  b2 : (1, 1)
    returns (B, 1) float32

    block_b     : max batch tile (multiple of 128). Sweep 8192-32768 (f32) /
                  up to 65536 (bf16); keep 2*tb*128*itemsize well under VMEM.
    stream_bf16 : stream x / weights as bf16 (halves dominant HBM read);
                  accumulation, bias and ReLU stay f32.
    """
    B, in_dim = x.shape
    hidden = w1.shape[1]

    tb = _choose_tile(B, block_b)
    grid = (pl.cdiv(B, tb),)

    # Tiny one-time weight-layout prep (a few KiB): feature-major weights keep
    # batch on the lane axis inside the kernel.
    w1T = w1.T                      # (hidden, in_dim)
    b1c = b1.reshape(hidden, 1)     # broadcast over lanes, stays f32
    w2T = w2.T                      # (OUT_DIM, hidden)
    b2s = b2.reshape(1, 1)          # SMEM scalar, stays f32

    if stream_bf16:
        x_in = x.astype(jnp.bfloat16)
        w1T = w1T.astype(jnp.bfloat16)
        w2T = w2T.astype(jnp.bfloat16)
    else:
        x_in = x

    vmem_bytes = _vmem_budget_bytes(tb, hidden, jnp.dtype(x_in.dtype).itemsize)

    out = pl.pallas_call(
        mlp_kernel,
        out_shape=jax.ShapeDtypeStruct((OUT_DIM, B), jnp.float32),
        grid=grid,
        in_specs=[
            # batch-tiled activations, native (B, 10) layout, double-buffered DMA
            pl.BlockSpec((tb, in_dim), lambda i: (i, 0)),
            # weights / bias stay VMEM-resident (constant block index)
            pl.BlockSpec((hidden, in_dim), lambda i: (0, 0)),
            pl.BlockSpec((hidden, 1), lambda i: (0, 0)),
            pl.BlockSpec((OUT_DIM, hidden), lambda i: (0, 0)),
            # tiny scalar bias lives in SMEM (avoids a padded (8,128) VMEM tile)
            pl.BlockSpec(memory_space=pltpu.MemorySpace.SMEM),
        ],
        out_specs=pl.BlockSpec((OUT_DIM, tb), lambda i: (0, i)),
        compiler_params=pltpu.CompilerParams(
            dimension_semantics=("parallel",),   # v7x: shard batch over 2 TCs
            vmem_limit_bytes=vmem_bytes,
        ),
    )(x_in, w1T, b1c, w2T, b2s)

    # (1, B) -> (B, 1): same element order, so this is a reshape, not a
    # transpose. Callers that can consume (B,) should use out[0] directly.
    return out.reshape(B, OUT_DIM)


def init_params(key, hidden_dim=HIDDEN_DIM):
    """Deterministic init mimicking torch.nn.Linear default (U(-1/sqrt(fan_in), +))."""
    k1, k2, k3, k4 = jax.random.split(key, 4)
    bound1 = 1.0 / jnp.sqrt(IN_DIM)
    bound2 = 1.0 / jnp.sqrt(hidden_dim)
    w1 = jax.random.uniform(k1, (IN_DIM, hidden_dim), jnp.float32, -bound1, bound1)
    b1 = jax.random.uniform(k2, (1, hidden_dim), jnp.float32, -bound1, bound1)
    w2 = jax.random.uniform(k3, (hidden_dim, OUT_DIM), jnp.float32, -bound2, bound2)
    b2 = jax.random.uniform(k4, (1, OUT_DIM), jnp.float32, -bound2, bound2)
    return w1, b1, w2, b2


def reference_forward(x, w1, b1, w2, b2):
    h = jnp.maximum(x @ w1 + b1, 0.0)
    return h @ w2 + b2


if __name__ == "__main__":
    key = jax.random.PRNGKey(0)
    k_x, k_x2, k_p = jax.random.split(key, 3)

    w1, b1, w2, b2 = init_params(k_p)

    # Small batch (matches the test harness scale); single grid step.
    B = 8
    x = jax.random.normal(k_x, (B, IN_DIM), dtype=jnp.float32)
    out = jax.block_until_ready(simple_model_forward(x, w1, b1, w2, b2))
    ref = reference_forward(x, w1, b1, w2, b2)
    assert out.shape == (B, OUT_DIM)
    assert jnp.allclose(out, ref, atol=1e-5, rtol=1e-5), "mismatch vs JAX reference (B=8)"

    # Larger, non-multiple-of-128 batch: exercises multi-step grid (4 steps)
    # and the ragged last block (no wrapper-side padding).
    B2 = 1000
    x2 = jax.random.normal(k_x2, (B2, IN_DIM), dtype=jnp.float32)
    out2 = jax.block_until_ready(simple_model_forward(x2, w1, b1, w2, b2))
    ref2 = reference_forward(x2, w1, b1, w2, b2)
    assert out2.shape == (B2, OUT_DIM)
    assert jnp.allclose(out2, ref2, atol=1e-5, rtol=1e-5), "mismatch vs JAX reference (B=1000)"

    # bf16-streaming path (HBM-traffic lever); looser tolerance for bf16 inputs.
    out3 = jax.block_until_ready(
        simple_model_forward(x2, w1, b1, w2, b2, stream_bf16=True)
    )
    assert jnp.allclose(out3, ref2, atol=5e-2, rtol=5e-2), "mismatch vs JAX reference (bf16)"

    print("KERNEL_OK")
</pallas_src>

<mosaic_0001>
module attributes {stable_mosaic.version = 11 : i64} {
  func.func @mlp_kernel(%arg0: i32, %arg1: memref<128x10xf32, #tpu.memory_space<vmem>>, %arg2: memref<32x10xf32, #tpu.memory_space<vmem>>, %arg3: memref<32x1xf32, #tpu.memory_space<vmem>>, %arg4: memref<1x32xf32, #tpu.memory_space<vmem>>, %arg5: memref<1x1xf32, #tpu.memory_space<smem>>, %arg6: memref<1x128xf32, #tpu.memory_space<vmem>>) attributes {dimension_semantics = [#tpu.dimension_semantics<parallel>], iteration_bounds = array<i64: 1>, scalar_prefetch = 0 : i64, scratch_operands = 0 : i64, tpu.core_type = #tpu.core_type<tc>, window_params = [{transform_indices = @transform_0, window_bounds = array<i64: 128, 10>}, {pipeline_mode = #tpu.pipeline_mode<synchronous>, transform_indices = @transform_1, window_bounds = array<i64: 32, 10>}, {pipeline_mode = #tpu.pipeline_mode<synchronous>, transform_indices = @transform_2, window_bounds = array<i64: 32, 1>}, {pipeline_mode = #tpu.pipeline_mode<synchronous>, transform_indices = @transform_3, window_bounds = array<i64: 1, 32>}, {transform_indices = @transform_4, window_bounds = array<i64: 1, 1>}, {transform_indices = @transform_5, window_bounds = array<i64: 1, 128>}]} {
    %c0 = arith.constant 0 : index
    %c0_0 = arith.constant 0 : index
    %0 = vector.load %arg1[%c0, %c0_0] : memref<128x10xf32, #tpu.memory_space<vmem>>, vector<128x10xf32>
    %c0_1 = arith.constant 0 : index
    %c0_2 = arith.constant 0 : index
    %1 = vector.load %arg2[%c0_1, %c0_2] : memref<32x10xf32, #tpu.memory_space<vmem>>, vector<32x10xf32>
    %cst = arith.constant dense<0.000000e+00> : vector<32x128xf32>
    %2 = tpu.matmul %1, %0, %cst {dimension_numbers = #tpu.dot_dimension_numbers<[1], [1], [0], [0], [0, 0, 1, 0], [], []>} : vector<32x10xf32>, vector<128x10xf32>, vector<32x128xf32> -> vector<32x128xf32>
    %c0_3 = arith.constant 0 : index
    %c0_4 = arith.constant 0 : index
    %3 = vector.load %arg3[%c0_3, %c0_4] : memref<32x1xf32, #tpu.memory_space<vmem>>, vector<32x1xf32>
    %4 = vector.broadcast %3 : vector<32x1xf32> to vector<32x128xf32>
    %5 = arith.addf %2, %4 : vector<32x128xf32>
    %cst_5 = arith.constant 0.000000e+00 : f32
    %6 = vector.broadcast %cst_5 : f32 to vector<32x128xf32>
    %7 = arith.maximumf %5, %6 : vector<32x128xf32>
    %c0_6 = arith.constant 0 : index
    %c0_7 = arith.constant 0 : index
    %8 = vector.load %arg4[%c0_6, %c0_7] : memref<1x32xf32, #tpu.memory_space<vmem>>, vector<1x32xf32>
    %cst_8 = arith.constant dense<0.000000e+00> : vector<1x128xf32>
    %9 = tpu.matmul %8, %7, %cst_8 {dimension_numbers = #tpu.dot_dimension_numbers<[1], [0], [0], [1], [0, 0, 1, 1], [], []>} : vector<1x32xf32>, vector<32x128xf32>, vector<1x128xf32> -> vector<1x128xf32>
    %c0_9 = arith.constant 0 : index
    %c0_10 = arith.constant 0 : index
    %10 = memref.load %arg5[%c0_9, %c0_10] : memref<1x1xf32, #tpu.memory_space<smem>>
    %11 = vector.broadcast %10 : f32 to vector<1x128xf32>
    %12 = arith.addf %9, %11 : vector<1x128xf32>
    %c0_11 = arith.constant 0 : index
    %c0_12 = arith.constant 0 : index
    %13 = vector.load %arg6[%c0_11, %c0_12] : memref<1x128xf32, #tpu.memory_space<vmem>>, vector<1x128xf32>
    tpu.vector_store %arg6[%c0_11, %c0_12], %12 {strides = array<i32>} : memref<1x128xf32, #tpu.memory_space<vmem>>, vector<1x128xf32>,
    return
  }
  func.func @transform_0(%arg0: i32) -> (i32, i32) {
    %c0_i32 = arith.constant 0 : i32
    %c0_i32_0 = arith.constant 0 : i32
    return %arg0, %c0_i32 : i32, i32
  }
  func.func @transform_1(%arg0: i32) -> (i32, i32) {
    %c0_i32 = arith.constant 0 : i32
    %c0_i32_0 = arith.constant 0 : i32
    %c0_i32_1 = arith.constant 0 : i32
    return %c0_i32, %c0_i32_0 : i32, i32
  }
  func.func @transform_2(%arg0: i32) -> (i32, i32) {
    %c0_i32 = arith.constant 0 : i32
    %c0_i32_0 = arith.constant 0 : i32
    %c0_i32_1 = arith.constant 0 : i32
    return %c0_i32, %c0_i32_0 : i32, i32
  }
  func.func @transform_3(%arg0: i32) -> (i32, i32) {
    %c0_i32 = arith.constant 0 : i32
    %c0_i32_0 = arith.constant 0 : i32
    %c0_i32_1 = arith.constant 0 : i32
    return %c0_i32, %c0_i32_0 : i32, i32
  }
  func.func @transform_4(%arg0: i32) -> (i32, i32) {
    %c0_i32 = arith.constant 0 : i32
    %c0_i32_0 = arith.constant 0 : i32
    %c0_i32_1 = arith.constant 0 : i32
    return %c0_i32, %c0_i32_0 : i32, i32
  }
  func.func @transform_5(%arg0: i32) -> (i32, i32) {
    %c0_i32 = arith.constant 0 : i32
    %c0_i32_0 = arith.constant 0 : i32
    return %c0_i32, %arg0 : i32, i32
  }
}

</mosaic_0001>

<bundles_post_ra>
// kernel: tpu_custom_call.1
= control target key start
LH: loop header
LB: loop body
LE: loop exit
PB: predicated region body
PF: predicated region fallthrough
CT: control target
= control target key end

     0   :  { %vm66_vm0 = vcmask 80896   ;;  %v431_v2 = vmov 0   ;;  %s582_s0 = inlined_call_operand.vmem [shape: f32[8,10], index: 0, kind: input, shape index: {}]   ;;  %s583_s1 = inlined_call_operand.vmem [shape: f32[32,10], index: 1, kind: input, shape index: {}]   ;;  %s584_s2 = inlined_call_operand.vmem [shape: f32[32,1], index: 2, kind: input, shape index: {}]   ;;  %s585_s3 = inlined_call_operand.vmem [shape: f32[1,32], index: 3, kind: input, shape index: {}]   ;;  %s586_s4 = inlined_call_operand.<no memory space> [shape: f32[1,1], index: 4, kind: input, shape index: {}]   ;;  %s587_s5 = inlined_call_operand.hbm [shape: f32[1,8], index: 5, kind: output, shape index: {}]  }
   0x1   :  { %v37_v0 = vld [vmem:[%s582_s0 + $0x78] sm:$0xff]  ;;  %v36_v1 = vld [vmem:[%s582_s0 + $0x70] sm:$0xff]  ;;  %408 = vset.pattern.permute.xlu1 %v431_v2  ;;  %407 = vset.pattern.permute.xlu0 %v431_v2  ;;  %v35_v3 = vld [vmem:[%s582_s0 + $0x68] sm:$0xff] }
   0x2   :  { %354 = vmatprep.subr.msk.mxu0 %vm66_vm0, %v37_v0  ;;  %v38_v4 = vld [vmem:[%s583_s1] sm:$0xff]  ;;  %v45_v5 = vld [vmem:[%s584_s2 + $0x18] sm:$0xff]  ;;  %v43_v6 = vld [vmem:[%s584_s2 + $0x8] sm:$0xff] }
   0x3   :  { %355 = vmatpush3.xpose.msk.msra.mxu0 %vm66_vm0, %v37_v0  ;;  %386 = vmatprep.mubr.msk.f32.mxu0 %vm66_vm0, %v38_v4  ;;  %v34_v7 = vld [vmem:[%s582_s0 + $0x60] sm:$0xff]  ;;  %v44_v8 = vld [vmem:[%s584_s2 + $0x10] sm:$0xff] }
   0x4   :  { %356 = vmatprep.subr.msk.mxu0 %vm66_vm0, %v36_v1  ;;  %63 = vperm.xlu0 %407, %v45_v5  }
   0x5   :  { %53 = vperm.xlu1 %408, %v43_v6  }
   0x7   :  { %357 = vmatpush3.xpose.msk.msra.mxu0 %vm66_vm0, %v36_v1 }
   0x8   :  { %358 = vmatprep.subr.msk.mxu0 %vm66_vm0, %v35_v3 }
   0x9   :  { %11 = vsyncpa [#allocation4], 0  ;;  %v42_v9 = vld [vmem:[%s584_s2] sm:$0xff]  ;;  %58 = vperm.xlu0 %407, %v44_v8   ;;  %v33_v10 = vld [vmem:[%s582_s0 + $0x58] sm:$0xff]  ;;  %v432_v25 = vmov 0.0   ;;  %vm433_vm1 = vmmov 0   ;;  %v218_v43 = vstv %s586_s4 }
   0xa   :  { %48 = vperm.xlu1 %408, %v42_v9   ;;  %v32_v11 = vld [vmem:[%s582_s0 + $0x50] sm:$0xff]  ;;  %v31_v12 = vld [vmem:[%s582_s0 + $0x48] sm:$0xff]  ;;  %v30_v13 = vld [vmem:[%s582_s0 + $0x40] sm:$0xff]  ;;  %392 = vmatprep.subr.mxu1 %v432_v25  ;;  %vm219_vm2 = vcmask 261120   ;;  %s434_s16 = smov [#allocation3]  }
   0xb   :  { %359 = vmatpush3.xpose.msk.msra.mxu0 %vm66_vm0, %v35_v3  ;;  %v29_v14 = vld [vmem:[%s582_s0 + $0x38] sm:$0xff]  ;;  %v28_v15 = vld [vmem:[%s582_s0 + $0x30] sm:$0xff]  ;;  %v27_v16 = vld [vmem:[%s582_s0 + $0x28] sm:$0xff]  ;;  %400 = vmatprep.mubr.msk.f32.mxu1 %vm433_vm1, %v432_v25  ;;  %s300_s17 = sshll.u32 %s434_s16, 4  ;;  %s301_s17 = int_to_ptr.vmem [resolvable:$true] %s300_s17 }
   0xc   :  { %360 = vmatprep.subr.msk.mxu0 %vm66_vm0, %v34_v7  ;;  %v26_v17 = vld [vmem:[%s582_s0 + $0x20] sm:$0xff]  ;;  %v25_v18 = vld [vmem:[%s582_s0 + $0x18] sm:$0xff]  ;;  %v24_v19 = vld [vmem:[%s582_s0 + $0x10] sm:$0xff]  ;;  %s409_s18 = scalar_lea.vmem %s301_s17, 16  ;;  %s413_s19 = scalar_lea.vmem %s301_s17, 32 }
   0xd   :  { %v23_v20 = vld [vmem:[%s582_s0 + $0x8] sm:$0xff]  ;;  %v22_v21 = vld [vmem:[%s582_s0] sm:$0xff]  ;;  %v40_v23 = vld [vmem:[%s583_s1 + $0x10] sm:$0xff]  ;;  %p410_p0 = scmp.ne.s32.totalorder %s301_s17, %s409_s18  ;;  %p414_p1 = scmp.lt.s32.totalorder %s301_s17, %s301_s17 }
   0xe   :  { %v39_v22 = vld [vmem:[%s583_s1 + $0x8] sm:$0xff]  ;;  %v41_v24 = vld [vmem:[%s583_s1 + $0x18] sm:$0xff]  ;;  %v216_v42 = vld [vmem:[%s585_s3] sm:$0x1]  ;;  %p415_p2 = scmp.lt.s32.totalorder %s413_s19, %s409_s18 }
   0xf   :  { %361 = vmatpush3.xpose.msk.msra.mxu0 %vm66_vm0, %v34_v7 }
  0x10   :  { %362 = vmatprep.subr.msk.mxu0 %vm66_vm0, %v33_v10  ;;  %p416_p3 = por %p415_p2, %p414_p1 }
  0x12   :  { %p417_p4 = pnand %p416_p3, %p410_p0 }
  0x13   :  { %363 = vmatpush3.xpose.msk.msra.mxu0 %vm66_vm0, %v33_v10 }
  0x14   :  { %364 = vmatprep.subr.msk.mxu0 %vm66_vm0, %v32_v11 }
  0x17   :  { %365 = vmatpush3.xpose.msk.msra.mxu0 %vm66_vm0, %v32_v11 }
  0x18   :  { %366 = vmatprep.subr.msk.mxu0 %vm66_vm0, %v31_v12 }
  0x1b   :  { %367 = vmatpush3.xpose.msk.msra.mxu0 %vm66_vm0, %v31_v12 }
  0x1c   :  { %368 = vmatprep.subr.msk.mxu0 %vm66_vm0, %v30_v13 }
  0x1f   :  { %369 = vmatpush3.xpose.msk.msra.mxu0 %vm66_vm0, %v30_v13 }
  0x20   :  { %370 = vmatprep.subr.msk.mxu0 %vm66_vm0, %v29_v14 }
  0x23   :  { %371 = vmatpush3.xpose.msk.msra.mxu0 %vm66_vm0, %v29_v14 }
  0x24   :  { %372 = vmatprep.subr.msk.mxu0 %vm66_vm0, %v28_v15 }
  0x27   :  { %373 = vmatpush3.xpose.msk.msra.mxu0 %vm66_vm0, %v28_v15 }
  0x28   :  { %374 = vmatprep.subr.msk.mxu0 %vm66_vm0, %v27_v16 }
  0x2b   :  { %375 = vmatpush3.xpose.msk.msra.mxu0 %vm66_vm0, %v27_v16 }
  0x2c   :  { %376 = vmatprep.subr.msk.mxu0 %vm66_vm0, %v26_v17 }
  0x2f   :  { %377 = vmatpush3.xpose.msk.msra.mxu0 %vm66_vm0, %v26_v17 }
  0x30   :  { %378 = vmatprep.subr.msk.mxu0 %vm66_vm0, %v25_v18 }
  0x33   :  { %379 = vmatpush3.xpose.msk.msra.mxu0 %vm66_vm0, %v25_v18 }
  0x34   :  { %380 = vmatprep.subr.msk.mxu0 %vm66_vm0, %v24_v19 }
  0x37   :  { %381 = vmatpush3.xpose.msk.msra.mxu0 %vm66_vm0, %v24_v19 }
  0x38   :  { %382 = vmatprep.subr.msk.mxu0 %vm66_vm0, %v23_v20 }
  0x3b   :  { %383 = vmatpush3.xpose.msk.msra.mxu0 %vm66_vm0, %v23_v20 }
  0x3c   :  { %384 = vmatprep.subr.msk.mxu0 %vm66_vm0, %v22_v21 }
  0x3f   :  { %385 = vmatpush3.xpose.msk.msra.mxu0 %vm66_vm0, %v22_v21 }
  0x42   :  { %387 = vmatmul.mubr.msk.f32.vlgmr.msra.gmra.mxu0 %vm66_vm0, %v39_v22 }
  0x43   :  { %389 = vmatprep.mubr.msk.f32.mxu0 %vm66_vm0, %v40_v23 }
  0x46   :  { %390 = vmatmul.mubr.msk.f32.gmra.mxu0 %vm66_vm0, %v41_v24 }
  0x7f   :  { %v64_v26 = vpop.permute.xlu0 %63 }
  0x80   :  { %v54_v27 = vpop.permute.xlu1 %53 }
  0x84   :  { %v59_v31 = vpop.permute.xlu0 %58 }
  0x85   :  { %v49_v33 = vpop.permute.xlu1 %48 }
 0x102   :  { %v388_v28 = vpop.f32.mrf.mxu0 }
 0x103   :  { %v199_v35 = vadd.f32 %v388_v28, %v54_v27 }
 0x104   :  { %v193_v29 = vpop.f32.mrf.mxu0 }
 0x105   :  { %v194_v38 = vadd.f32 %v193_v29, %v49_v33  ;;  %v213_v40 = vmax.f32 %v199_v35, 0.0 }
 0x106   :  { %v391_v30 = vpop.f32.mrf.mxu0 }
 0x107   :  { %v209_v32 = vadd.f32 %v391_v30, %v64_v26  ;;  %v212_v41 = vmax.f32 %v194_v38, 0.0 }
 0x108   :  { %v203_v34 = vpop.f32.mrf.mxu0 }
 0x109   :  { %v215_v36 = vmax.f32 %v209_v32, 0.0  ;;  %v204_v37 = vadd.f32 %v203_v34, %v59_v31 }
 0x10b   :  { %v214_v39 = vmax.f32 %v204_v37, 0.0  ;;  %393 = vmatpush3.msra.mxu1 %v215_v36 }
 0x10c   :  { %394 = vmatprep.subr.mxu1 %v432_v25 }
 0x10d   :  { %395 = vmatpush3.msra.mxu1 %v214_v39 }
 0x10e   :  { %396 = vmatprep.subr.mxu1 %v432_v25 }
 0x10f   :  { %397 = vmatpush3.msra.mxu1 %v213_v40 }
 0x110   :  { %398 = vmatprep.subr.mxu1 %v432_v25 }
 0x111   :  { %399 = vmatpush3.msra.mxu1 %v212_v41 }
 0x112   :  { %401 = vmatmul.mubr.msk.f32.vlgmr.msra.gmra.mxu1 %vm219_vm2, %v216_v42 }
 0x1d2   :  { %v289_v44 = vpop.f32.mrf.mxu1 }
 0x1d3   :  { %v290_v45 = vadd.f32 %v289_v44, %v218_v43 }
 0x1d4   :  { %v402_v46 = vpop.f32.mrf.mxu1 }
 0x1d5   :  { %293 = vst [vmem:[#allocation3] sm:$0x1] %v290_v45 }
 0x1d6   :  { %420 = shalt.err (!%p417_p4)
}
 0x1d7   :  { %303 = dma.vmem_to_hbm [thread:$0]  %s301_s17, 16, %s587_s5, [#allocation4]  }
 0x1d8   :  { %429 = dma.done.wait [#allocation4], 16  }
 0x1d9   :  { %430 = vsyncadd [#allocation4], 4294967280 }
 0x1da   :  { %307 = vsyncpa [#allocation4], 1 }

</bundles_post_ra>
